<compile_context>
chip_gen: v7x
topology: tpu7x:2x2x1
jax: 0.10.0
libtpu: 0.0.40
codegen_flags: <defaults>
</compile_context>

<pallas_src>
import math

import jax
import jax.numpy as jnp
from jax.experimental import pallas as pl
from jax.experimental.pallas import tpu as pltpu

N = 8        # number of tokens (rows of X)
D = 32       # input_dim
H = 4        # n_heads
DK = D // H  # d_k = d_v = 8
EPS = 1e-5   # torch.nn.LayerNorm default eps

# Constants describing torch's odd `context.transpose(1, 2).reshape(-1, H*d_v)` glue:
ROWS_PER_HEAD = (DK * N) // D   # = 2  rows of the flattened context produced by each head
CHUNKS_PER_ROW = D // N         # = 4  length-N chunks that make up one flattened row


# ---------------------------------------------------------------------------
# Fused Pallas kernel
# ---------------------------------------------------------------------------
def _encoder_layer_kernel(x_ref, xt_ref, wqt_ref, wk_ref, wvt_ref, wfc_ref,
                          g1_ref, b1_ref, wl1_ref, bl1_ref, g2_ref, b2_ref,
                          out_ref, cflat_ref):
    x = x_ref[...]                 # (N, D)
    xt = xt_ref[...]               # (D, N) — pre-transposed X

    # --- Q/K/V projections: 3 full-width canonical MXU matmuls -------------------------
    # wqt already carries the 1/sqrt(d_k) attention scale, so qt = (scale * Q)^T.
    k = jnp.dot(x, wk_ref[...], preferred_element_type=jnp.float32)      # (N, D)
    qt = jnp.dot(wqt_ref[...], xt, preferred_element_type=jnp.float32)   # (D, N)
    vt = jnp.dot(wvt_ref[...], xt, preferred_element_type=jnp.float32)   # (D, N) = V^T

    # --- Per-head attention in transposed form ------------------------------------------
    for h in range(H):
        s0 = h * DK
        # st[m, n] = scores[n, m] = (Q_h[n,:] . K_h[m,:]) / sqrt(d_k)
        st = jnp.dot(k[:, s0:s0 + DK], qt[s0:s0 + DK, :],
                     preferred_element_type=jnp.float32)                 # (N, N)
        st = st - jnp.max(st, axis=0, keepdims=True)                     # stable softmax
        e = jnp.exp(st)
        pt = e / jnp.sum(e, axis=0, keepdims=True)                       # attn^T   (N, N)
        # ctxt[dv, n] = context_h[n, dv] = sum_m attn_h[n, m] * V_h[m, dv]
        ctxt = jnp.dot(vt[s0:s0 + DK, :], pt,
                       preferred_element_type=jnp.float32)               # (DK, N)

        # torch glue `context.transpose(1, 2).reshape(-1, H*d_v)`:
        # flattened-context row (h*2 + s) is the row-major flattening of ctxt rows
        # [s*4, s*4+4).  Scatter those length-N chunks into a lane-dense (N, D) scratch.
        for s in range(ROWS_PER_HEAD):
            r = h * ROWS_PER_HEAD + s
            for a in range(CHUNKS_PER_ROW):
                row = s * CHUNKS_PER_ROW + a
                cflat_ref[r:r + 1, a * N:(a + 1) * N] = ctxt[row:row + 1, :]

    ctx_flat = cflat_ref[...]                                            # (N, D)

    # --- fc projection + residual + LayerNorm1 ------------------------------------------
    attn_out = jnp.dot(ctx_flat, wfc_ref[...], preferred_element_type=jnp.float32)
    h1 = attn_out + x
    mu1 = jnp.mean(h1, axis=-1, keepdims=True)
    var1 = jnp.mean(jnp.square(h1 - mu1), axis=-1, keepdims=True)
    x1 = (h1 - mu1) * jax.lax.rsqrt(var1 + EPS) * g1_ref[...] + b1_ref[...]

    # --- l1 (with bias) + residual + LayerNorm2 ------------------------------------------
    o = jnp.dot(x1, wl1_ref[...], preferred_element_type=jnp.float32) + bl1_ref[...]
    h2 = o + x1
    mu2 = jnp.mean(h2, axis=-1, keepdims=True)
    var2 = jnp.mean(jnp.square(h2 - mu2), axis=-1, keepdims=True)
    out_ref[...] = (h2 - mu2) * jax.lax.rsqrt(var2 + EPS) * g2_ref[...] + b2_ref[...]


# ---------------------------------------------------------------------------
# Wrapper
# ---------------------------------------------------------------------------
def encoder_layer(x, params):
    wq, wk, wv, wfc, g1, b1, wl1, bl1, g2, b2 = params
    scale = 1.0 / math.sqrt(DK)

    # Tiny host-side prep (fused by XLA under jit): pre-transposed X / W_Q / W_V let every
    # in-kernel matmul stay canonical; attention scale folded into W_Q once.
    xt = x.T                      # (D, N)
    wqt = (wq * scale).T          # (D, D)
    wvt = wv.T                    # (D, D)
    g1_2d, b1_2d = g1.reshape(1, D), b1.reshape(1, D)
    g2_2d, b2_2d = g2.reshape(1, D), b2.reshape(1, D)
    bl1_2d = bl1.reshape(1, D)

    def vmem():
        return pl.BlockSpec(memory_space=pltpu.MemorySpace.VMEM)

    return pl.pallas_call(
        _encoder_layer_kernel,
        out_shape=jax.ShapeDtypeStruct((N, D), jnp.float32),
        in_specs=[vmem() for _ in range(12)],
        out_specs=vmem(),
        scratch_shapes=[pltpu.VMEM((N, D), jnp.float32)],   # flattened context, lane-dense
    )(x, xt, wqt, wk, wvt, wfc, g1_2d, b1_2d, wl1, bl1_2d, g2_2d, b2_2d)


# ---------------------------------------------------------------------------
# Pure-JAX reference (op-by-op mirror of the PyTorch forward)
# ---------------------------------------------------------------------------
def encoder_layer_ref(x, params):
    wq, wk, wv, wfc, g1, b1, wl1, bl1, g2, b2 = params
    Q = (x @ wq).reshape(-1, H, DK).transpose(1, 0, 2)   # (H, N, DK)
    K = (x @ wk).reshape(-1, H, DK).transpose(1, 0, 2)
    V = (x @ wv).reshape(-1, H, DK).transpose(1, 0, 2)
    scores = Q @ K.transpose(0, 2, 1) / jnp.sqrt(jnp.float32(DK))
    attn = jax.nn.softmax(scores, axis=-1)
    context = attn @ V                                   # (H, N, DK)
    context = jnp.transpose(context, (0, 2, 1)).reshape(-1, H * DK)
    attn_out = context @ wfc

    def ln(y, g, b):
        mu = y.mean(-1, keepdims=True)
        var = ((y - mu) ** 2).mean(-1, keepdims=True)
        return (y - mu) / jnp.sqrt(var + EPS) * g + b

    x1 = ln(attn_out + x, g1, b1)
    o = x1 @ wl1 + bl1
    return ln(o + x1, g2, b2)


# ---------------------------------------------------------------------------
if __name__ == "__main__":
    key = jax.random.PRNGKey(0)
    ks = jax.random.split(key, 11)

    x = jax.random.normal(ks[0], (N, D), jnp.float32)

    wq = 0.1 * jax.random.normal(ks[1], (D, D), jnp.float32)
    wk = 0.1 * jax.random.normal(ks[2], (D, D), jnp.float32)
    wv = 0.1 * jax.random.normal(ks[3], (D, D), jnp.float32)
    wfc = 0.1 * jax.random.normal(ks[4], (D, D), jnp.float32)
    g1 = 1.0 + 0.05 * jax.random.normal(ks[5], (D,), jnp.float32)
    b1 = 0.05 * jax.random.normal(ks[6], (D,), jnp.float32)
    wl1 = 0.1 * jax.random.normal(ks[7], (D, D), jnp.float32)
    bl1 = 0.05 * jax.random.normal(ks[8], (D,), jnp.float32)
    g2 = 1.0 + 0.05 * jax.random.normal(ks[9], (D,), jnp.float32)
    b2 = 0.05 * jax.random.normal(ks[10], (D,), jnp.float32)

    params = (wq, wk, wv, wfc, g1, b1, wl1, bl1, g2, b2)

    run = jax.jit(encoder_layer)
    out = jax.block_until_ready(run(x, params))

    ref = encoder_layer_ref(x, params)
    assert out.shape == (N, D), out.shape
    max_err = float(jnp.max(jnp.abs(out - ref)))
    assert max_err < 1e-4, f"max abs error {max_err}"

    print("KERNEL_OK")
</pallas_src>

<mosaic_0001>
module attributes {stable_mosaic.version = 11 : i64} {
  func.func @_encoder_layer_kernel(%arg0: memref<8x32xf32, #tpu.memory_space<vmem>>, %arg1: memref<32x8xf32, #tpu.memory_space<vmem>>, %arg2: memref<32x32xf32, #tpu.memory_space<vmem>>, %arg3: memref<32x32xf32, #tpu.memory_space<vmem>>, %arg4: memref<32x32xf32, #tpu.memory_space<vmem>>, %arg5: memref<32x32xf32, #tpu.memory_space<vmem>>, %arg6: memref<1x32xf32, #tpu.memory_space<vmem>>, %arg7: memref<1x32xf32, #tpu.memory_space<vmem>>, %arg8: memref<32x32xf32, #tpu.memory_space<vmem>>, %arg9: memref<1x32xf32, #tpu.memory_space<vmem>>, %arg10: memref<1x32xf32, #tpu.memory_space<vmem>>, %arg11: memref<1x32xf32, #tpu.memory_space<vmem>>, %arg12: memref<8x32xf32, #tpu.memory_space<vmem>>, %arg13: memref<8x32xf32, #tpu.memory_space<vmem>>) attributes {dimension_semantics = [], scalar_prefetch = 0 : i64, scratch_operands = 1 : i64, tpu.core_type = #tpu.core_type<tc>} {
    %c0 = arith.constant 0 : index
    %c0_0 = arith.constant 0 : index
    %0 = vector.load %arg0[%c0, %c0_0] : memref<8x32xf32, #tpu.memory_space<vmem>>, vector<8x32xf32>
    %c0_1 = arith.constant 0 : index
    %c0_2 = arith.constant 0 : index
    %1 = vector.load %arg1[%c0_1, %c0_2] : memref<32x8xf32, #tpu.memory_space<vmem>>, vector<32x8xf32>
    %c0_3 = arith.constant 0 : index
    %c0_4 = arith.constant 0 : index
    %2 = vector.load %arg3[%c0_3, %c0_4] : memref<32x32xf32, #tpu.memory_space<vmem>>, vector<32x32xf32>
    %cst = arith.constant dense<0.000000e+00> : vector<8x32xf32>
    %3 = tpu.matmul %0, %2, %cst {dimension_numbers = #tpu.dot_dimension_numbers<[1], [0], [0], [1], [0, 0, 1, 1], [], []>} : vector<8x32xf32>, vector<32x32xf32>, vector<8x32xf32> -> vector<8x32xf32>
    %c0_5 = arith.constant 0 : index
    %c0_6 = arith.constant 0 : index
    %4 = vector.load %arg2[%c0_5, %c0_6] : memref<32x32xf32, #tpu.memory_space<vmem>>, vector<32x32xf32>
    %cst_7 = arith.constant dense<0.000000e+00> : vector<32x8xf32>
    %5 = tpu.matmul %4, %1, %cst_7 {dimension_numbers = #tpu.dot_dimension_numbers<[1], [0], [0], [1], [0, 0, 1, 1], [], []>} : vector<32x32xf32>, vector<32x8xf32>, vector<32x8xf32> -> vector<32x8xf32>
    %c0_8 = arith.constant 0 : index
    %c0_9 = arith.constant 0 : index
    %6 = vector.load %arg4[%c0_8, %c0_9] : memref<32x32xf32, #tpu.memory_space<vmem>>, vector<32x32xf32>
    %cst_10 = arith.constant dense<0.000000e+00> : vector<32x8xf32>
    %7 = tpu.matmul %6, %1, %cst_10 {dimension_numbers = #tpu.dot_dimension_numbers<[1], [0], [0], [1], [0, 0, 1, 1], [], []>} : vector<32x32xf32>, vector<32x8xf32>, vector<32x8xf32> -> vector<32x8xf32>
    %8 = vector.extract_strided_slice %3 {offsets = [0, 0], sizes = [8, 8], strides = [1, 1]} : vector<8x32xf32> to vector<8x8xf32>
    %9 = vector.extract_strided_slice %5 {offsets = [0, 0], sizes = [8, 8], strides = [1, 1]} : vector<32x8xf32> to vector<8x8xf32>
    %cst_11 = arith.constant dense<0.000000e+00> : vector<8x8xf32>
    %10 = tpu.matmul %8, %9, %cst_11 {dimension_numbers = #tpu.dot_dimension_numbers<[1], [0], [0], [1], [0, 0, 1, 1], [], []>} : vector<8x8xf32>, vector<8x8xf32>, vector<8x8xf32> -> vector<8x8xf32>
    %cst_12 = arith.constant dense<0xFF800000> : vector<8xf32>
    %11 = vector.multi_reduction <maximumf>, %10, %cst_12 [0] : vector<8x8xf32> to vector<8xf32>
    %12 = vector.shape_cast %11 : vector<8xf32> to vector<1x8xf32>
    %13 = vector.broadcast %12 : vector<1x8xf32> to vector<8x8xf32>
    %14 = arith.subf %10, %13 : vector<8x8xf32>
    %15 = math.exp %14 : vector<8x8xf32>
    %cst_13 = arith.constant dense<0.000000e+00> : vector<8xf32>
    %16 = vector.multi_reduction <add>, %15, %cst_13 [0] : vector<8x8xf32> to vector<8xf32>
    %17 = vector.shape_cast %16 : vector<8xf32> to vector<1x8xf32>
    %18 = vector.broadcast %17 : vector<1x8xf32> to vector<8x8xf32>
    %19 = arith.divf %15, %18 : vector<8x8xf32>
    %20 = vector.extract_strided_slice %7 {offsets = [0, 0], sizes = [8, 8], strides = [1, 1]} : vector<32x8xf32> to vector<8x8xf32>
    %cst_14 = arith.constant dense<0.000000e+00> : vector<8x8xf32>
    %21 = tpu.matmul %20, %19, %cst_14 {dimension_numbers = #tpu.dot_dimension_numbers<[1], [0], [0], [1], [0, 0, 1, 1], [], []>} : vector<8x8xf32>, vector<8x8xf32>, vector<8x8xf32> -> vector<8x8xf32>
    %22 = vector.extract_strided_slice %21 {offsets = [0, 0], sizes = [1, 8], strides = [1, 1]} : vector<8x8xf32> to vector<1x8xf32>
    %c0_15 = arith.constant 0 : index
    %c0_16 = arith.constant 0 : index
    %23 = vector.load %arg13[%c0_15, %c0_16] : memref<8x32xf32, #tpu.memory_space<vmem>>, vector<1x8xf32>
    tpu.vector_store %arg13[%c0_15, %c0_16], %22 {strides = array<i32>} : memref<8x32xf32, #tpu.memory_space<vmem>>, vector<1x8xf32>,
    %24 = vector.extract_strided_slice %21 {offsets = [1, 0], sizes = [1, 8], strides = [1, 1]} : vector<8x8xf32> to vector<1x8xf32>
    %c0_17 = arith.constant 0 : index
    %c8 = arith.constant 8 : index
    %25 = vector.load %arg13[%c0_17, %c8] : memref<8x32xf32, #tpu.memory_space<vmem>>, vector<1x8xf32>
    tpu.vector_store %arg13[%c0_17, %c8], %24 {strides = array<i32>} : memref<8x32xf32, #tpu.memory_space<vmem>>, vector<1x8xf32>,
    %26 = vector.extract_strided_slice %21 {offsets = [2, 0], sizes = [1, 8], strides = [1, 1]} : vector<8x8xf32> to vector<1x8xf32>
    %c0_18 = arith.constant 0 : index
    %c16 = arith.constant 16 : index
    %27 = vector.load %arg13[%c0_18, %c16] : memref<8x32xf32, #tpu.memory_space<vmem>>, vector<1x8xf32>
    tpu.vector_store %arg13[%c0_18, %c16], %26 {strides = array<i32>} : memref<8x32xf32, #tpu.memory_space<vmem>>, vector<1x8xf32>,
    %28 = vector.extract_strided_slice %21 {offsets = [3, 0], sizes = [1, 8], strides = [1, 1]} : vector<8x8xf32> to vector<1x8xf32>
    %c0_19 = arith.constant 0 : index
    %c24 = arith.constant 24 : index
    %29 = vector.load %arg13[%c0_19, %c24] : memref<8x32xf32, #tpu.memory_space<vmem>>, vector<1x8xf32>
    tpu.vector_store %arg13[%c0_19, %c24], %28 {strides = array<i32>} : memref<8x32xf32, #tpu.memory_space<vmem>>, vector<1x8xf32>,
    %30 = vector.extract_strided_slice %21 {offsets = [4, 0], sizes = [1, 8], strides = [1, 1]} : vector<8x8xf32> to vector<1x8xf32>
    %c1 = arith.constant 1 : index
    %c0_20 = arith.constant 0 : index
    %31 = vector.load %arg13[%c1, %c0_20] : memref<8x32xf32, #tpu.memory_space<vmem>>, vector<1x8xf32>
    tpu.vector_store %arg13[%c1, %c0_20], %30 {strides = array<i32>} : memref<8x32xf32, #tpu.memory_space<vmem>>, vector<1x8xf32>,
    %32 = vector.extract_strided_slice %21 {offsets = [5, 0], sizes = [1, 8], strides = [1, 1]} : vector<8x8xf32> to vector<1x8xf32>
    %c1_21 = arith.constant 1 : index
    %c8_22 = arith.constant 8 : index
    %33 = vector.load %arg13[%c1_21, %c8_22] : memref<8x32xf32, #tpu.memory_space<vmem>>, vector<1x8xf32>
    tpu.vector_store %arg13[%c1_21, %c8_22], %32 {strides = array<i32>} : memref<8x32xf32, #tpu.memory_space<vmem>>, vector<1x8xf32>,
    %34 = vector.extract_strided_slice %21 {offsets = [6, 0], sizes = [1, 8], strides = [1, 1]} : vector<8x8xf32> to vector<1x8xf32>
    %c1_23 = arith.constant 1 : index
    %c16_24 = arith.constant 16 : index
    %35 = vector.load %arg13[%c1_23, %c16_24] : memref<8x32xf32, #tpu.memory_space<vmem>>, vector<1x8xf32>
    tpu.vector_store %arg13[%c1_23, %c16_24], %34 {strides = array<i32>} : memref<8x32xf32, #tpu.memory_space<vmem>>, vector<1x8xf32>,
    %36 = vector.extract_strided_slice %21 {offsets = [7, 0], sizes = [1, 8], strides = [1, 1]} : vector<8x8xf32> to vector<1x8xf32>
    %c1_25 = arith.constant 1 : index
    %c24_26 = arith.constant 24 : index
    %37 = vector.load %arg13[%c1_25, %c24_26] : memref<8x32xf32, #tpu.memory_space<vmem>>, vector<1x8xf32>
    tpu.vector_store %arg13[%c1_25, %c24_26], %36 {strides = array<i32>} : memref<8x32xf32, #tpu.memory_space<vmem>>, vector<1x8xf32>,
    %38 = vector.extract_strided_slice %3 {offsets = [0, 8], sizes = [8, 8], strides = [1, 1]} : vector<8x32xf32> to vector<8x8xf32>
    %39 = vector.extract_strided_slice %5 {offsets = [8, 0], sizes = [8, 8], strides = [1, 1]} : vector<32x8xf32> to vector<8x8xf32>
    %cst_27 = arith.constant dense<0.000000e+00> : vector<8x8xf32>
    %40 = tpu.matmul %38, %39, %cst_27 {dimension_numbers = #tpu.dot_dimension_numbers<[1], [0], [0], [1], [0, 0, 1, 1], [], []>} : vector<8x8xf32>, vector<8x8xf32>, vector<8x8xf32> -> vector<8x8xf32>
    %cst_28 = arith.constant dense<0xFF800000> : vector<8xf32>
    %41 = vector.multi_reduction <maximumf>, %40, %cst_28 [0] : vector<8x8xf32> to vector<8xf32>
    %42 = vector.shape_cast %41 : vector<8xf32> to vector<1x8xf32>
    %43 = vector.broadcast %42 : vector<1x8xf32> to vector<8x8xf32>
    %44 = arith.subf %40, %43 : vector<8x8xf32>
    %45 = math.exp %44 : vector<8x8xf32>
    %cst_29 = arith.constant dense<0.000000e+00> : vector<8xf32>
    %46 = vector.multi_reduction <add>, %45, %cst_29 [0] : vector<8x8xf32> to vector<8xf32>
    %47 = vector.shape_cast %46 : vector<8xf32> to vector<1x8xf32>
    %48 = vector.broadcast %47 : vector<1x8xf32> to vector<8x8xf32>
    %49 = arith.divf %45, %48 : vector<8x8xf32>
    %50 = vector.extract_strided_slice %7 {offsets = [8, 0], sizes = [8, 8], strides = [1, 1]} : vector<32x8xf32> to vector<8x8xf32>
    %cst_30 = arith.constant dense<0.000000e+00> : vector<8x8xf32>
    %51 = tpu.matmul %50, %49, %cst_30 {dimension_numbers = #tpu.dot_dimension_numbers<[1], [0], [0], [1], [0, 0, 1, 1], [], []>} : vector<8x8xf32>, vector<8x8xf32>, vector<8x8xf32> -> vector<8x8xf32>
    %52 = vector.extract_strided_slice %51 {offsets = [0, 0], sizes = [1, 8], strides = [1, 1]} : vector<8x8xf32> to vector<1x8xf32>
    %c2 = arith.constant 2 : index
    %c0_31 = arith.constant 0 : index
    %53 = vector.load %arg13[%c2, %c0_31] : memref<8x32xf32, #tpu.memory_space<vmem>>, vector<1x8xf32>
    tpu.vector_store %arg13[%c2, %c0_31], %52 {strides = array<i32>} : memref<8x32xf32, #tpu.memory_space<vmem>>, vector<1x8xf32>,
    %54 = vector.extract_strided_slice %51 {offsets = [1, 0], sizes = [1, 8], strides = [1, 1]} : vector<8x8xf32> to vector<1x8xf32>
    %c2_32 = arith.constant 2 : index
    %c8_33 = arith.constant 8 : index
    %55 = vector.load %arg13[%c2_32, %c8_33] : memref<8x32xf32, #tpu.memory_space<vmem>>, vector<1x8xf32>
    tpu.vector_store %arg13[%c2_32, %c8_33], %54 {strides = array<i32>} : memref<8x32xf32, #tpu.memory_space<vmem>>, vector<1x8xf32>,
    %56 = vector.extract_strided_slice %51 {offsets = [2, 0], sizes = [1, 8], strides = [1, 1]} : vector<8x8xf32> to vector<1x8xf32>
    %c2_34 = arith.constant 2 : index
    %c16_35 = arith.constant 16 : index
    %57 = vector.load %arg13[%c2_34, %c16_35] : memref<8x32xf32, #tpu.memory_space<vmem>>, vector<1x8xf32>
    tpu.vector_store %arg13[%c2_34, %c16_35], %56 {strides = array<i32>} : memref<8x32xf32, #tpu.memory_space<vmem>>, vector<1x8xf32>,
    %58 = vector.extract_strided_slice %51 {offsets = [3, 0], sizes = [1, 8], strides = [1, 1]} : vector<8x8xf32> to vector<1x8xf32>
    %c2_36 = arith.constant 2 : index
    %c24_37 = arith.constant 24 : index
    %59 = vector.load %arg13[%c2_36, %c24_37] : memref<8x32xf32, #tpu.memory_space<vmem>>, vector<1x8xf32>
    tpu.vector_store %arg13[%c2_36, %c24_37], %58 {strides = array<i32>} : memref<8x32xf32, #tpu.memory_space<vmem>>, vector<1x8xf32>,
    %60 = vector.extract_strided_slice %51 {offsets = [4, 0], sizes = [1, 8], strides = [1, 1]} : vector<8x8xf32> to vector<1x8xf32>
    %c3 = arith.constant 3 : index
    %c0_38 = arith.constant 0 : index
    %61 = vector.load %arg13[%c3, %c0_38] : memref<8x32xf32, #tpu.memory_space<vmem>>, vector<1x8xf32>
    tpu.vector_store %arg13[%c3, %c0_38], %60 {strides = array<i32>} : memref<8x32xf32, #tpu.memory_space<vmem>>, vector<1x8xf32>,
    %62 = vector.extract_strided_slice %51 {offsets = [5, 0], sizes = [1, 8], strides = [1, 1]} : vector<8x8xf32> to vector<1x8xf32>
    %c3_39 = arith.constant 3 : index
    %c8_40 = arith.constant 8 : index
    %63 = vector.load %arg13[%c3_39, %c8_40] : memref<8x32xf32, #tpu.memory_space<vmem>>, vector<1x8xf32>
    tpu.vector_store %arg13[%c3_39, %c8_40], %62 {strides = array<i32>} : memref<8x32xf32, #tpu.memory_space<vmem>>, vector<1x8xf32>,
    %64 = vector.extract_strided_slice %51 {offsets = [6, 0], sizes = [1, 8], strides = [1, 1]} : vector<8x8xf32> to vector<1x8xf32>
    %c3_41 = arith.constant 3 : index
    %c16_42 = arith.constant 16 : index
    %65 = vector.load %arg13[%c3_41, %c16_42] : memref<8x32xf32, #tpu.memory_space<vmem>>, vector<1x8xf32>
    tpu.vector_store %arg13[%c3_41, %c16_42], %64 {strides = array<i32>} : memref<8x32xf32, #tpu.memory_space<vmem>>, vector<1x8xf32>,
    %66 = vector.extract_strided_slice %51 {offsets = [7, 0], sizes = [1, 8], strides = [1, 1]} : vector<8x8xf32> to vector<1x8xf32>
    %c3_43 = arith.constant 3 : index
    %c24_44 = arith.constant 24 : index
    %67 = vector.load %arg13[%c3_43, %c24_44] : memref<8x32xf32, #tpu.memory_space<vmem>>, vector<1x8xf32>
    tpu.vector_store %arg13[%c3_43, %c24_44], %66 {strides = array<i32>} : memref<8x32xf32, #tpu.memory_space<vmem>>, vector<1x8xf32>,
    %68 = vector.extract_strided_slice %3 {offsets = [0, 16], sizes = [8, 8], strides = [1, 1]} : vector<8x32xf32> to vector<8x8xf32>
    %69 = vector.extract_strided_slice %5 {offsets = [16, 0], sizes = [8, 8], strides = [1, 1]} : vector<32x8xf32> to vector<8x8xf32>
    %cst_45 = arith.constant dense<0.000000e+00> : vector<8x8xf32>
    %70 = tpu.matmul %68, %69, %cst_45 {dimension_numbers = #tpu.dot_dimension_numbers<[1], [0], [0], [1], [0, 0, 1, 1], [], []>} : vector<8x8xf32>, vector<8x8xf32>, vector<8x8xf32> -> vector<8x8xf32>
    %cst_46 = arith.constant dense<0xFF800000> : vector<8xf32>
    %71 = vector.multi_reduction <maximumf>, %70, %cst_46 [0] : vector<8x8xf32> to vector<8xf32>
    %72 = vector.shape_cast %71 : vector<8xf32> to vector<1x8xf32>
    %73 = vector.broadcast %72 : vector<1x8xf32> to vector<8x8xf32>
    %74 = arith.subf %70, %73 : vector<8x8xf32>
    %75 = math.exp %74 : vector<8x8xf32>
    %cst_47 = arith.constant dense<0.000000e+00> : vector<8xf32>
    %76 = vector.multi_reduction <add>, %75, %cst_47 [0] : vector<8x8xf32> to vector<8xf32>
    %77 = vector.shape_cast %76 : vector<8xf32> to vector<1x8xf32>
    %78 = vector.broadcast %77 : vector<1x8xf32> to vector<8x8xf32>
    %79 = arith.divf %75, %78 : vector<8x8xf32>
    %80 = vector.extract_strided_slice %7 {offsets = [16, 0], sizes = [8, 8], strides = [1, 1]} : vector<32x8xf32> to vector<8x8xf32>
    %cst_48 = arith.constant dense<0.000000e+00> : vector<8x8xf32>
    %81 = tpu.matmul %80, %79, %cst_48 {dimension_numbers = #tpu.dot_dimension_numbers<[1], [0], [0], [1], [0, 0, 1, 1], [], []>} : vector<8x8xf32>, vector<8x8xf32>, vector<8x8xf32> -> vector<8x8xf32>
    %82 = vector.extract_strided_slice %81 {offsets = [0, 0], sizes = [1, 8], strides = [1, 1]} : vector<8x8xf32> to vector<1x8xf32>
    %c4 = arith.constant 4 : index
    %c0_49 = arith.constant 0 : index
    %83 = vector.load %arg13[%c4, %c0_49] : memref<8x32xf32, #tpu.memory_space<vmem>>, vector<1x8xf32>
    tpu.vector_store %arg13[%c4, %c0_49], %82 {strides = array<i32>} : memref<8x32xf32, #tpu.memory_space<vmem>>, vector<1x8xf32>,
    %84 = vector.extract_strided_slice %81 {offsets = [1, 0], sizes = [1, 8], strides = [1, 1]} : vector<8x8xf32> to vector<1x8xf32>
    %c4_50 = arith.constant 4 : index
    %c8_51 = arith.constant 8 : index
    %85 = vector.load %arg13[%c4_50, %c8_51] : memref<8x32xf32, #tpu.memory_space<vmem>>, vector<1x8xf32>
    tpu.vector_store %arg13[%c4_50, %c8_51], %84 {strides = array<i32>} : memref<8x32xf32, #tpu.memory_space<vmem>>, vector<1x8xf32>,
    %86 = vector.extract_strided_slice %81 {offsets = [2, 0], sizes = [1, 8], strides = [1, 1]} : vector<8x8xf32> to vector<1x8xf32>
    %c4_52 = arith.constant 4 : index
    %c16_53 = arith.constant 16 : index
    %87 = vector.load %arg13[%c4_52, %c16_53] : memref<8x32xf32, #tpu.memory_space<vmem>>, vector<1x8xf32>
    tpu.vector_store %arg13[%c4_52, %c16_53], %86 {strides = array<i32>} : memref<8x32xf32, #tpu.memory_space<vmem>>, vector<1x8xf32>,
    %88 = vector.extract_strided_slice %81 {offsets = [3, 0], sizes = [1, 8], strides = [1, 1]} : vector<8x8xf32> to vector<1x8xf32>
    %c4_54 = arith.constant 4 : index
    %c24_55 = arith.constant 24 : index
    %89 = vector.load %arg13[%c4_54, %c24_55] : memref<8x32xf32, #tpu.memory_space<vmem>>, vector<1x8xf32>
    tpu.vector_store %arg13[%c4_54, %c24_55], %88 {strides = array<i32>} : memref<8x32xf32, #tpu.memory_space<vmem>>, vector<1x8xf32>,
    %90 = vector.extract_strided_slice %81 {offsets = [4, 0], sizes = [1, 8], strides = [1, 1]} : vector<8x8xf32> to vector<1x8xf32>
    %c5 = arith.constant 5 : index
    %c0_56 = arith.constant 0 : index
    %91 = vector.load %arg13[%c5, %c0_56] : memref<8x32xf32, #tpu.memory_space<vmem>>, vector<1x8xf32>
    tpu.vector_store %arg13[%c5, %c0_56], %90 {strides = array<i32>} : memref<8x32xf32, #tpu.memory_space<vmem>>, vector<1x8xf32>,
    %92 = vector.extract_strided_slice %81 {offsets = [5, 0], sizes = [1, 8], strides = [1, 1]} : vector<8x8xf32> to vector<1x8xf32>
    %c5_57 = arith.constant 5 : index
    %c8_58 = arith.constant 8 : index
    %93 = vector.load %arg13[%c5_57, %c8_58] : memref<8x32xf32, #tpu.memory_space<vmem>>, vector<1x8xf32>
    tpu.vector_store %arg13[%c5_57, %c8_58], %92 {strides = array<i32>} : memref<8x32xf32, #tpu.memory_space<vmem>>, vector<1x8xf32>,
    %94 = vector.extract_strided_slice %81 {offsets = [6, 0], sizes = [1, 8], strides = [1, 1]} : vector<8x8xf32> to vector<1x8xf32>
    %c5_59 = arith.constant 5 : index
    %c16_60 = arith.constant 16 : index
    %95 = vector.load %arg13[%c5_59, %c16_60] : memref<8x32xf32, #tpu.memory_space<vmem>>, vector<1x8xf32>
    tpu.vector_store %arg13[%c5_59, %c16_60], %94 {strides = array<i32>} : memref<8x32xf32, #tpu.memory_space<vmem>>, vector<1x8xf32>,
    %96 = vector.extract_strided_slice %81 {offsets = [7, 0], sizes = [1, 8], strides = [1, 1]} : vector<8x8xf32> to vector<1x8xf32>
    %c5_61 = arith.constant 5 : index
    %c24_62 = arith.constant 24 : index
    %97 = vector.load %arg13[%c5_61, %c24_62] : memref<8x32xf32, #tpu.memory_space<vmem>>, vector<1x8xf32>
    tpu.vector_store %arg13[%c5_61, %c24_62], %96 {strides = array<i32>} : memref<8x32xf32, #tpu.memory_space<vmem>>, vector<1x8xf32>,
    %98 = vector.extract_strided_slice %3 {offsets = [0, 24], sizes = [8, 8], strides = [1, 1]} : vector<8x32xf32> to vector<8x8xf32>
    %99 = vector.extract_strided_slice %5 {offsets = [24, 0], sizes = [8, 8], strides = [1, 1]} : vector<32x8xf32> to vector<8x8xf32>
    %cst_63 = arith.constant dense<0.000000e+00> : vector<8x8xf32>
    %100 = tpu.matmul %98, %99, %cst_63 {dimension_numbers = #tpu.dot_dimension_numbers<[1], [0], [0], [1], [0, 0, 1, 1], [], []>} : vector<8x8xf32>, vector<8x8xf32>, vector<8x8xf32> -> vector<8x8xf32>
    %cst_64 = arith.constant dense<0xFF800000> : vector<8xf32>
    %101 = vector.multi_reduction <maximumf>, %100, %cst_64 [0] : vector<8x8xf32> to vector<8xf32>
    %102 = vector.shape_cast %101 : vector<8xf32> to vector<1x8xf32>
    %103 = vector.broadcast %102 : vector<1x8xf32> to vector<8x8xf32>
    %104 = arith.subf %100, %103 : vector<8x8xf32>
    %105 = math.exp %104 : vector<8x8xf32>
    %cst_65 = arith.constant dense<0.000000e+00> : vector<8xf32>
    %106 = vector.multi_reduction <add>, %105, %cst_65 [0] : vector<8x8xf32> to vector<8xf32>
    %107 = vector.shape_cast %106 : vector<8xf32> to vector<1x8xf32>
    %108 = vector.broadcast %107 : vector<1x8xf32> to vector<8x8xf32>
    %109 = arith.divf %105, %108 : vector<8x8xf32>
    %110 = vector.extract_strided_slice %7 {offsets = [24, 0], sizes = [8, 8], strides = [1, 1]} : vector<32x8xf32> to vector<8x8xf32>
    %cst_66 = arith.constant dense<0.000000e+00> : vector<8x8xf32>
    %111 = tpu.matmul %110, %109, %cst_66 {dimension_numbers = #tpu.dot_dimension_numbers<[1], [0], [0], [1], [0, 0, 1, 1], [], []>} : vector<8x8xf32>, vector<8x8xf32>, vector<8x8xf32> -> vector<8x8xf32>
    %112 = vector.extract_strided_slice %111 {offsets = [0, 0], sizes = [1, 8], strides = [1, 1]} : vector<8x8xf32> to vector<1x8xf32>
    %c6 = arith.constant 6 : index
    %c0_67 = arith.constant 0 : index
    %113 = vector.load %arg13[%c6, %c0_67] : memref<8x32xf32, #tpu.memory_space<vmem>>, vector<1x8xf32>
    tpu.vector_store %arg13[%c6, %c0_67], %112 {strides = array<i32>} : memref<8x32xf32, #tpu.memory_space<vmem>>, vector<1x8xf32>,
    %114 = vector.extract_strided_slice %111 {offsets = [1, 0], sizes = [1, 8], strides = [1, 1]} : vector<8x8xf32> to vector<1x8xf32>
    %c6_68 = arith.constant 6 : index
    %c8_69 = arith.constant 8 : index
    %115 = vector.load %arg13[%c6_68, %c8_69] : memref<8x32xf32, #tpu.memory_space<vmem>>, vector<1x8xf32>
    tpu.vector_store %arg13[%c6_68, %c8_69], %114 {strides = array<i32>} : memref<8x32xf32, #tpu.memory_space<vmem>>, vector<1x8xf32>,
    %116 = vector.extract_strided_slice %111 {offsets = [2, 0], sizes = [1, 8], strides = [1, 1]} : vector<8x8xf32> to vector<1x8xf32>
    %c6_70 = arith.constant 6 : index
    %c16_71 = arith.constant 16 : index
    %117 = vector.load %arg13[%c6_70, %c16_71] : memref<8x32xf32, #tpu.memory_space<vmem>>, vector<1x8xf32>
    tpu.vector_store %arg13[%c6_70, %c16_71], %116 {strides = array<i32>} : memref<8x32xf32, #tpu.memory_space<vmem>>, vector<1x8xf32>,
    %118 = vector.extract_strided_slice %111 {offsets = [3, 0], sizes = [1, 8], strides = [1, 1]} : vector<8x8xf32> to vector<1x8xf32>
    %c6_72 = arith.constant 6 : index
    %c24_73 = arith.constant 24 : index
    %119 = vector.load %arg13[%c6_72, %c24_73] : memref<8x32xf32, #tpu.memory_space<vmem>>, vector<1x8xf32>
    tpu.vector_store %arg13[%c6_72, %c24_73], %118 {strides = array<i32>} : memref<8x32xf32, #tpu.memory_space<vmem>>, vector<1x8xf32>,
    %120 = vector.extract_strided_slice %111 {offsets = [4, 0], sizes = [1, 8], strides = [1, 1]} : vector<8x8xf32> to vector<1x8xf32>
    %c7 = arith.constant 7 : index
    %c0_74 = arith.constant 0 : index
    %121 = vector.load %arg13[%c7, %c0_74] : memref<8x32xf32, #tpu.memory_space<vmem>>, vector<1x8xf32>
    tpu.vector_store %arg13[%c7, %c0_74], %120 {strides = array<i32>} : memref<8x32xf32, #tpu.memory_space<vmem>>, vector<1x8xf32>,
    %122 = vector.extract_strided_slice %111 {offsets = [5, 0], sizes = [1, 8], strides = [1, 1]} : vector<8x8xf32> to vector<1x8xf32>
    %c7_75 = arith.constant 7 : index
    %c8_76 = arith.constant 8 : index
    %123 = vector.load %arg13[%c7_75, %c8_76] : memref<8x32xf32, #tpu.memory_space<vmem>>, vector<1x8xf32>
    tpu.vector_store %arg13[%c7_75, %c8_76], %122 {strides = array<i32>} : memref<8x32xf32, #tpu.memory_space<vmem>>, vector<1x8xf32>,
    %124 = vector.extract_strided_slice %111 {offsets = [6, 0], sizes = [1, 8], strides = [1, 1]} : vector<8x8xf32> to vector<1x8xf32>
    %c7_77 = arith.constant 7 : index
    %c16_78 = arith.constant 16 : index
    %125 = vector.load %arg13[%c7_77, %c16_78] : memref<8x32xf32, #tpu.memory_space<vmem>>, vector<1x8xf32>
    tpu.vector_store %arg13[%c7_77, %c16_78], %124 {strides = array<i32>} : memref<8x32xf32, #tpu.memory_space<vmem>>, vector<1x8xf32>,
    %126 = vector.extract_strided_slice %111 {offsets = [7, 0], sizes = [1, 8], strides = [1, 1]} : vector<8x8xf32> to vector<1x8xf32>
    %c7_79 = arith.constant 7 : index
    %c24_80 = arith.constant 24 : index
    %127 = vector.load %arg13[%c7_79, %c24_80] : memref<8x32xf32, #tpu.memory_space<vmem>>, vector<1x8xf32>
    tpu.vector_store %arg13[%c7_79, %c24_80], %126 {strides = array<i32>} : memref<8x32xf32, #tpu.memory_space<vmem>>, vector<1x8xf32>,
    %c0_81 = arith.constant 0 : index
    %c0_82 = arith.constant 0 : index
    %128 = vector.load %arg13[%c0_81, %c0_82] : memref<8x32xf32, #tpu.memory_space<vmem>>, vector<8x32xf32>
    %c0_83 = arith.constant 0 : index
    %c0_84 = arith.constant 0 : index
    %129 = vector.load %arg5[%c0_83, %c0_84] : memref<32x32xf32, #tpu.memory_space<vmem>>, vector<32x32xf32>
    %cst_85 = arith.constant dense<0.000000e+00> : vector<8x32xf32>
    %130 = tpu.matmul %128, %129, %cst_85 {dimension_numbers = #tpu.dot_dimension_numbers<[1], [0], [0], [1], [0, 0, 1, 1], [], []>} : vector<8x32xf32>, vector<32x32xf32>, vector<8x32xf32> -> vector<8x32xf32>
    %131 = arith.addf %130, %0 : vector<8x32xf32>
    %cst_86 = arith.constant dense<0.000000e+00> : vector<8xf32>
    %132 = vector.multi_reduction <add>, %131, %cst_86 [1] : vector<8x32xf32> to vector<8xf32>
    %133 = vector.shape_cast %132 : vector<8xf32> to vector<8x1xf32>
    %cst_87 = arith.constant 3.200000e+01 : f32
    %134 = vector.broadcast %cst_87 : f32 to vector<8x1xf32>
    %135 = arith.divf %133, %134 : vector<8x1xf32>
    %136 = vector.broadcast %135 : vector<8x1xf32> to vector<8x32xf32>
    %137 = arith.subf %131, %136 : vector<8x32xf32>
    %138 = arith.mulf %137, %137 : vector<8x32xf32>
    %cst_88 = arith.constant dense<0.000000e+00> : vector<8xf32>
    %139 = vector.multi_reduction <add>, %138, %cst_88 [1] : vector<8x32xf32> to vector<8xf32>
    %140 = vector.shape_cast %139 : vector<8xf32> to vector<8x1xf32>
    %cst_89 = arith.constant 3.200000e+01 : f32
    %141 = vector.broadcast %cst_89 : f32 to vector<8x1xf32>
    %142 = arith.divf %140, %141 : vector<8x1xf32>
    %143 = vector.broadcast %135 : vector<8x1xf32> to vector<8x32xf32>
    %144 = arith.subf %131, %143 : vector<8x32xf32>
    %cst_90 = arith.constant 9.99999974E-6 : f32
    %145 = vector.broadcast %cst_90 : f32 to vector<8x1xf32>
    %146 = arith.addf %142, %145 : vector<8x1xf32>
    %147 = math.rsqrt %146 : vector<8x1xf32>
    %148 = vector.broadcast %147 : vector<8x1xf32> to vector<8x32xf32>
    %149 = arith.mulf %144, %148 : vector<8x32xf32>
    %c0_91 = arith.constant 0 : index
    %c0_92 = arith.constant 0 : index
    %150 = vector.load %arg6[%c0_91, %c0_92] : memref<1x32xf32, #tpu.memory_space<vmem>>, vector<1x32xf32>
    %151 = vector.broadcast %150 : vector<1x32xf32> to vector<8x32xf32>
    %152 = arith.mulf %149, %151 : vector<8x32xf32>
    %c0_93 = arith.constant 0 : index
    %c0_94 = arith.constant 0 : index
    %153 = vector.load %arg7[%c0_93, %c0_94] : memref<1x32xf32, #tpu.memory_space<vmem>>, vector<1x32xf32>
    %154 = vector.broadcast %153 : vector<1x32xf32> to vector<8x32xf32>
    %155 = arith.addf %152, %154 : vector<8x32xf32>
    %c0_95 = arith.constant 0 : index
    %c0_96 = arith.constant 0 : index
    %156 = vector.load %arg8[%c0_95, %c0_96] : memref<32x32xf32, #tpu.memory_space<vmem>>, vector<32x32xf32>
    %cst_97 = arith.constant dense<0.000000e+00> : vector<8x32xf32>
    %157 = tpu.matmul %155, %156, %cst_97 {dimension_numbers = #tpu.dot_dimension_numbers<[1], [0], [0], [1], [0, 0, 1, 1], [], []>} : vector<8x32xf32>, vector<32x32xf32>, vector<8x32xf32> -> vector<8x32xf32>
    %c0_98 = arith.constant 0 : index
    %c0_99 = arith.constant 0 : index
    %158 = vector.load %arg9[%c0_98, %c0_99] : memref<1x32xf32, #tpu.memory_space<vmem>>, vector<1x32xf32>
    %159 = vector.broadcast %158 : vector<1x32xf32> to vector<8x32xf32>
    %160 = arith.addf %157, %159 : vector<8x32xf32>
    %161 = arith.addf %160, %155 : vector<8x32xf32>
    %cst_100 = arith.constant dense<0.000000e+00> : vector<8xf32>
    %162 = vector.multi_reduction <add>, %161, %cst_100 [1] : vector<8x32xf32> to vector<8xf32>
    %163 = vector.shape_cast %162 : vector<8xf32> to vector<8x1xf32>
    %cst_101 = arith.constant 3.200000e+01 : f32
    %164 = vector.broadcast %cst_101 : f32 to vector<8x1xf32>
    %165 = arith.divf %163, %164 : vector<8x1xf32>
    %166 = vector.broadcast %165 : vector<8x1xf32> to vector<8x32xf32>
    %167 = arith.subf %161, %166 : vector<8x32xf32>
    %168 = arith.mulf %167, %167 : vector<8x32xf32>
    %cst_102 = arith.constant dense<0.000000e+00> : vector<8xf32>
    %169 = vector.multi_reduction <add>, %168, %cst_102 [1] : vector<8x32xf32> to vector<8xf32>
    %170 = vector.shape_cast %169 : vector<8xf32> to vector<8x1xf32>
    %cst_103 = arith.constant 3.200000e+01 : f32
    %171 = vector.broadcast %cst_103 : f32 to vector<8x1xf32>
    %172 = arith.divf %170, %171 : vector<8x1xf32>
    %173 = vector.broadcast %165 : vector<8x1xf32> to vector<8x32xf32>
    %174 = arith.subf %161, %173 : vector<8x32xf32>
    %cst_104 = arith.constant 9.99999974E-6 : f32
    %175 = vector.broadcast %cst_104 : f32 to vector<8x1xf32>
    %176 = arith.addf %172, %175 : vector<8x1xf32>
    %177 = math.rsqrt %176 : vector<8x1xf32>
    %178 = vector.broadcast %177 : vector<8x1xf32> to vector<8x32xf32>
    %179 = arith.mulf %174, %178 : vector<8x32xf32>
    %c0_105 = arith.constant 0 : index
    %c0_106 = arith.constant 0 : index
    %180 = vector.load %arg10[%c0_105, %c0_106] : memref<1x32xf32, #tpu.memory_space<vmem>>, vector<1x32xf32>
    %181 = vector.broadcast %180 : vector<1x32xf32> to vector<8x32xf32>
    %182 = arith.mulf %179, %181 : vector<8x32xf32>
    %c0_107 = arith.constant 0 : index
    %c0_108 = arith.constant 0 : index
    %183 = vector.load %arg11[%c0_107, %c0_108] : memref<1x32xf32, #tpu.memory_space<vmem>>, vector<1x32xf32>
    %184 = vector.broadcast %183 : vector<1x32xf32> to vector<8x32xf32>
    %185 = arith.addf %182, %184 : vector<8x32xf32>
    %c0_109 = arith.constant 0 : index
    %c0_110 = arith.constant 0 : index
    %186 = vector.load %arg12[%c0_109, %c0_110] : memref<8x32xf32, #tpu.memory_space<vmem>>, vector<8x32xf32>
    tpu.vector_store %arg12[%c0_109, %c0_110], %185 {strides = array<i32>} : memref<8x32xf32, #tpu.memory_space<vmem>>, vector<8x32xf32>,
    return
  }
}

</mosaic_0001>

<bundles_post_ra>
// kernel: encoder_layer.1
= control target key start
LH: loop header
LB: loop body
LE: loop exit
PB: predicated region body
PF: predicated region fallthrough
CT: control target
= control target key end

     0   :  { %v1568_v3 = vmov 0.0|0.0   ;;  %vm1569_vm0 = vmmov 0   ;;  %v1570_v8 = vmov 0.0   ;;  %vm51_vm1 = vcmask 261120   ;;  %s1870_s0 = inlined_call_operand.vmem [shape: f32[8,32], index: 0, kind: input, shape index: {}]   ;;  %s1871_s1 = inlined_call_operand.vmem [shape: f32[32,8], index: 1, kind: input, shape index: {}]   ;;  %s1872_s2 = inlined_call_operand.vmem [shape: f32[32,32], index: 2, kind: input, shape index: {}]   ;;  %s1873_s3 = inlined_call_operand.vmem [shape: f32[32,32], index: 3, kind: input, shape index: {}]   ;;  %s1874_s4 = inlined_call_operand.vmem [shape: f32[32,32], index: 4, kind: input, shape index: {}]   ;;  %s1875_s5 = inlined_call_operand.vmem [shape: f32[32,32], index: 5, kind: input, shape index: {}]   ;;  %s1876_s6 = inlined_call_operand.vmem [shape: f32[1,32], index: 6, kind: input, shape index: {}]   ;;  %s1877_s7 = inlined_call_operand.vmem [shape: f32[1,32], index: 7, kind: input, shape index: {}]   ;;  %s1878_s8 = inlined_call_operand.vmem [shape: f32[32,32], index: 8, kind: input, shape index: {}]   ;;  %s1879_s9 = inlined_call_operand.vmem [shape: f32[1,32], index: 9, kind: input, shape index: {}]   ;;  %s1880_s10 = inlined_call_operand.vmem [shape: f32[1,32], index: 10, kind: input, shape index: {}]   ;;  %s1881_s11 = inlined_call_operand.vmem [shape: f32[1,32], index: 11, kind: input, shape index: {}]   ;;  %s1882_s12 = inlined_call_operand.hbm [shape: f32[8,32], index: 12, kind: output, shape index: {}]  }
   0x1   :  { %v47_v0 = vld [vmem:[%s1873_s3] sm:$0xff]  ;;  %v48_v1 = vld [vmem:[%s1873_s3 + $0x8] sm:$0xff]  ;;  %1480 = vmatprep.subr.bf16.mxu0 %v1568_v3  ;;  %v49_v6 = vld [vmem:[%s1873_s3 + $0x10] sm:$0xff]  ;;  %1387 = vmatprep.mubr.msk.f32.mxu0 %vm1569_vm0, %v1570_v8 }
   0x2   :  { %v43_v2 = vld [vmem:[%s1871_s1] sm:$0xff]  ;;  %v1481_v4 = vpack.c.bf16 %v48_v1, %v47_v0  ;;  %v44_v5 = vld [vmem:[%s1871_s1 + $0x8] sm:$0xff]  ;;  %v50_v7 = vld [vmem:[%s1873_s3 + $0x18] sm:$0xff] }
   0x3   :  { %v1486_v9 = vpack.c.bf16 %v44_v5, %v43_v2  ;;  %v45_v10 = vld [vmem:[%s1871_s1 + $0x10] sm:$0xff]  ;;  %v46_v11 = vld [vmem:[%s1871_s1 + $0x18] sm:$0xff]  ;;  %v1484_v12 = vpack.c.bf16 %v50_v7, %v49_v6  ;;  %v125_v14 = vld [vmem:[%s1872_s2] sm:$0xff] }
   0x4   :  { %1482 = vmatpush3.bf16.msra.mxu0 %v1481_v4  ;;  %v1490_v13 = vpack.c.bf16 %v46_v11, %v45_v10 }
   0x5   :  { %1487 = vmatprep.subr.bf16.mxu1 %v1486_v9  ;;  %1483 = vmatprep.subr.bf16.mxu0 %v1568_v3 }
   0x6   :  { %17 = vsyncpa [#allocation4], 0  ;;  %1489 = vmatpush3.bf16.msra.mxu1 %v1486_v9  ;;  %1398 = vmatprep.mubr.msk.f32.mxu1 %vm51_vm1, %v125_v14  ;;  %v1678_v15 = vld [vmem:[%s1870_s0] sm:$0xff]  ;;  %v126_v16 = vld [vmem:[%s1872_s2 + $0x8] sm:$0xff]  ;;  %s1571_s15 = smov 104   ;;  %s1572_s16 = smov 120  }
   0x7   :  { %1491 = vmatprep.subr.bf16.mxu1 %v1490_v13  ;;  %v127_v17 = vld [vmem:[%s1872_s2 + $0x10] sm:$0xff]  ;;  %v128_v18 = vld [vmem:[%s1872_s2 + $0x18] sm:$0xff]  ;;  %v226_v19 = vld [vmem:[%s1874_s4] sm:$0xff]  ;;  %vm327_vm2 = vcmask 64512   ;;  %vm493_vm3 = vcmask 57344   ;;  %vm511_vm4 = vcmask 61444  }
   0x8   :  { %1485 = vmatpush3.bf16.msra.mxu0 %v1484_v12  ;;  %v227_v20 = vld [vmem:[%s1874_s4 + $0x8] sm:$0xff]  ;;  %v228_v21 = vld [vmem:[%s1874_s4 + $0x10] sm:$0xff]  ;;  %v229_v22 = vld [vmem:[%s1874_s4 + $0x18] sm:$0xff]  ;;  %s1573_s4 = smov 112   ;;  %s1574_s17 = smov 8   ;;  %vm499_vm5 = vcmask 123969  }
   0x9   :  { %1495 = vmatprep.subr.bf16.mxu0 %v1486_v9  ;;  %s1575_s18 = smov 16   ;;  %s1576_s19 = smov 24   ;;  %vm513_vm6 = vcmask 128069   ;;  %vm504_vm7 = vcmask 190594   ;;  %vm515_vm8 = vcmask 194694   ;;  %vm509_vm9 = vcmask 257219  }
   0xa   :  { %1493 = vmatpush3.bf16.msra.mxu1 %v1490_v13  ;;  %vm517_vm10 = vcmask 261319  }
   0xb   :  { %1388 = vmatmul.mubr.msk.f32.vlgmr.msra.gmra.mrb[0].mxu0 %vm51_vm1, %v1678_v15  ;;  %1418 = vmatprep.subr.mxu1 %v1570_v8 }
   0xc   :  { %1497 = vmatpush3.bf16.msra.mxu0 %v1486_v9  ;;  %1412 = vmatprep.mubr.msk.f32.mxu0 %vm51_vm1, %v226_v19 }
   0xd   :  { %1399 = vmatmul.mubr.msk.f32.vlgmr.msra.gmra.mrb[0].mxu1 %vm51_vm1, %v126_v16  ;;  %1499 = vmatprep.subr.bf16.mxu0 %v1490_v13 }
   0xe   :  { %1401 = vmatprep.mubr.msk.f32.mxu1 %vm51_vm1, %v127_v17 }
  0x10   :  { %1501 = vmatpush3.bf16.msra.mxu0 %v1490_v13 }
  0x11   :  { %1402 = vmatmul.mubr.msk.f32.gmra.mrb[2].mxu1 %vm51_vm1, %v128_v18  ;;  %1428 = vmatprep.subr.mxu0 %v1570_v8 }
  0x12   :  { %1420 = vmatprep.mubr.msk.f32.mxu1 %vm1569_vm0, %v1570_v8 }
  0x13   :  { %1413 = vmatmul.mubr.msk.f32.vlgmr.msra.gmra.mrb[2].mxu0 %vm51_vm1, %v227_v20 }
  0x14   :  { %1415 = vmatprep.mubr.msk.f32.mxu0 %vm51_vm1, %v228_v21 }
  0x17   :  { %1416 = vmatmul.mubr.msk.f32.gmra.mrb[4].mxu0 %vm51_vm1, %v229_v22 }
  0x18   :  { %1430 = vmatprep.mubr.msk.f32.mxu0 %vm1569_vm0, %v1570_v8 }
  0xde   :  { %v121_v23 = vpop.f32.mrb[0].mxu0 }
  0xdf   :  { %887 = vrot.lane.b32.xlu1 %v121_v23, %s1571_s15  ;;  %519 = vrot.lane.b32.xlu0 %v121_v23, %s1572_s16  ;;  %v1389_v24 = vpop.f32.mrb[1].mxu0 }
  0xe0   :  { %v1400_v25 = vpop.f32.mrb[0].mxu1 }
  0xe1   :  { %v207_v26 = vpop.f32.mrb[1].mxu1  ;;  %1429 = vmatpush3.msra.mxu0 %v1400_v25 }
  0xe2   :  { %1419 = vmatpush3.msra.mxu1 %v207_v26  ;;  %1438 = vmatprep.subr.mxu0 %v1570_v8 }
  0xe3   :  { %1421 = vmatmul.mubr.msk.f32.vlgmr.msra.gmra.mrb[4].mxu1 %vm327_vm2, %v121_v23  ;;  %703 = vrot.lane.b32.xlu0 %v121_v23, %s1573_s4 }
  0xe4   :  { %v1403_v27 = vpop.f32.mrb[2].mxu1  ;;  %1423 = vmatprep.subr.mxu1 %v1570_v8  ;;  %1425 = vmatprep.mubr.msk.f32.mxu1 %vm1569_vm0, %v1570_v8 }
  0xe5   :  { %v217_v28 = vpop.f32.mrb[3].mxu1 }
  0xe6   :  { %v1732_v32 = vpop.f32.mrb[2].mxu0 }
  0xe7   :  { %v308_v33 = vpop.f32.mrb[3].mxu0 }
  0xea   :  { %v1734_v34 = vpop.f32.mrb[4].mxu0 }
  0xeb   :  { %v1736_v35 = vpop.f32.mrb[5].mxu0 }
 0x151   :  { %v520_v29 = vpop.permute.xlu0 %519  ;;  %v888_v31 = vpop.permute.xlu1 %887 }
 0x152   :  { %1431 = vmatmul.mubr.msk.f32.vlgmr.msra.gmra.mrb[6].mxu0 %vm327_vm2, %v520_v29 }
 0x153   :  { %1439 = vmatpush3.msra.mxu0 %v217_v28  ;;  %1440 = vmatprep.mubr.msk.f32.mxu0 %vm1569_vm0, %v1570_v8 }
 0x154   :  { %1448 = vmatprep.subr.mxu0 %v1570_v8 }
 0x155   :  { %v704_v30 = vpop.permute.xlu0 %703 }
 0x156   :  { %1441 = vmatmul.mubr.msk.f32.vlgmr.msra.gmra.mrb[8].mxu0 %vm327_vm2, %v704_v30 }
 0x157   :  { %1449 = vmatpush3.msra.mxu0 %v1403_v27  ;;  %1450 = vmatprep.mubr.msk.f32.mxu0 %vm1569_vm0, %v1570_v8 }
 0x158   :  { %1502 = vmatprep.subr.bf16.mxu0 %v1568_v3 }
 0x15a   :  { %1451 = vmatmul.mubr.msk.f32.vlgmr.msra.gmra.mrb[10].mxu0 %vm327_vm2, %v888_v31 }
 0x15b   :  { %1466 = vmatprep.mubr.msk.f32.mxu0 %vm1569_vm0, %v1570_v8 }
 0x1b6   :  { %v397_v36 = vpop.f32.mrb[4].mxu1 }
 0x1b7   :  { %v401_v37 = vsel %vm327_vm2, %v397_v36, -inf  ;;  %v1422_v38 = vpop.f32.mrb[5].mxu1 }
 0x1b8   :  { %v402_v39 = vrot.slane %v401_v37, 4 }
 0x1ba   :  { %v403_v40 = vmax.f32 %v401_v37, %v402_v39 }
 0x1bc   :  { %v404_v41 = vrot.slane %v403_v40, 2 }
 0x1be   :  { %v405_v42 = vmax.f32 %v403_v40, %v404_v41 }
 0x1c0   :  { %v406_v43 = vrot.slane %v405_v42, 1 }
 0x1c2   :  { %v407_v44 = vmax.f32 %v405_v42, %v406_v43 }
 0x1c4   :  { %v408_v45 = vsub.f32 %v397_v36, %v407_v44 }
 0x1c6   :  { %v409_v46 = vmul.f32 1.442695, %v408_v45 }
 0x1c8   :  { %1524 = vpow2.f32 %v409_v46 }
 0x1d2   :  { %v1525_v47 = vpop.eup %1524 }
 0x1d3   :  { %v411_v48 = vsel %vm327_vm2, %v1525_v47, 0.0 }
 0x1d4   :  { %v412_v49 = vrot.slane %v411_v48, 4 }
 0x1d6   :  { %v413_v50 = vadd.f32 %v412_v49, %v411_v48 }
 0x1d8   :  { %v414_v51 = vrot.slane %v413_v50, 2 }
 0x1da   :  { %v415_v52 = vadd.f32 %v414_v51, %v413_v50 }
 0x1dc   :  { %v416_v53 = vrot.slane %v415_v52, 1 }
 0x1de   :  { %v417_v54 = vadd.f32 %v416_v53, %v415_v52 }
 0x1e0   :  { %1526 = vrcp.f32 %v417_v54 }
 0x1ea   :  { %v1527_v55 = vpop.eup %1526 }
 0x1eb   :  { %v419_v56 = vmul.f32 %v1527_v55, %v1525_v47 }
 0x1ed   :  { %1424 = vmatpush3.msra.mxu1 %v419_v56 }
 0x1ee   :  { %1426 = vmatmul.mubr.msk.f32.vlgmr.msra.gmra.mrb[6].mxu1 %vm327_vm2, %v308_v33  ;;  %1433 = vmatprep.subr.mxu1 %v1570_v8 }
 0x1ef   :  { %1435 = vmatprep.mubr.msk.f32.mxu1 %vm1569_vm0, %v1570_v8 }
 0x225   :  { %v589_v57 = vpop.f32.mrb[6].mxu0 }
 0x226   :  { %v593_v58 = vsel %vm327_vm2, %v589_v57, -inf  ;;  %v1432_v59 = vpop.f32.mrb[7].mxu0 }
 0x227   :  { %v594_v60 = vrot.slane %v593_v58, 4 }
 0x229   :  { %v595_v61 = vmax.f32 %v593_v58, %v594_v60  ;;  %v773_v62 = vpop.f32.mrb[8].mxu0 }
 0x22a   :  { %v777_v63 = vsel %vm327_vm2, %v773_v62, -inf  ;;  %v1442_v0 = vpop.f32.mrb[9].mxu0 }
 0x22b   :  { %v596_v1 = vrot.slane %v595_v61, 2  ;;  %v778_v2 = vrot.slane %v777_v63, 4 }
 0x22d   :  { %v597_v4 = vmax.f32 %v595_v61, %v596_v1  ;;  %v779_v5 = vmax.f32 %v777_v63, %v778_v2  ;;  %v957_v6 = vpop.f32.mrb[10].mxu0  ;;  %v1072_v1 = vld [vmem:[%s1875_s5] sm:$0xff]  ;;  %v1073_v2 = vld [vmem:[%s1875_s5 + $0x8] sm:$0xff] }
 0x22e   :  { %v961_v7 = vsel %vm327_vm2, %v957_v6, -inf  ;;  %v1452_v9 = vpop.f32.mrb[11].mxu0 }
 0x22f   :  { %v598_v10 = vrot.slane %v597_v4, 1  ;;  %v780_v11 = vrot.slane %v779_v5, 2  ;;  %v962_v12 = vrot.slane %v961_v7, 4  ;;  %v1075_v9 = vld [vmem:[%s1875_s5 + $0x18] sm:$0xff] }
 0x231   :  { %v599_v13 = vmax.f32 %v597_v4, %v598_v10  ;;  %v781_v14 = vmax.f32 %v779_v5, %v780_v11  ;;  %v963_v16 = vmax.f32 %v961_v7, %v962_v12  ;;  %v1074_v7 = vld [vmem:[%s1875_s5 + $0x10] sm:$0xff] }
 0x232   :  { %v1506_v11 = vpack.c.bf16 %v1075_v9, %v1074_v7 }
 0x233   :  { %v600_v17 = vsub.f32 %v589_v57, %v599_v13  ;;  %v782_v18 = vrot.slane %v781_v14, 1  ;;  %v964_v19 = vrot.slane %v963_v16, 2 }
 0x235   :  { %v601_v20 = vmul.f32 1.442695, %v600_v17  ;;  %v783_v21 = vmax.f32 %v781_v14, %v782_v18  ;;  %v965_v22 = vmax.f32 %v963_v16, %v964_v19 }
 0x237   :  { %1528 = vpow2.f32 %v601_v20  ;;  %v784_v23 = vsub.f32 %v773_v62, %v783_v21  ;;  %v966_v24 = vrot.slane %v965_v22, 1 }
 0x239   :  { %v785_v25 = vmul.f32 1.442695, %v784_v23  ;;  %v967_v26 = vmax.f32 %v965_v22, %v966_v24 }
 0x23b   :  { %1530 = vpow2.f32 %v785_v25  ;;  %v968_v27 = vsub.f32 %v957_v6, %v967_v26  ;;  %v1503_v6 = vpack.c.bf16 %v1073_v2, %v1072_v1 }
 0x23d   :  { %v969_v28 = vmul.f32 1.442695, %v968_v27  ;;  %1504 = vmatpush3.bf16.msra.mxu0 %v1503_v6 }
 0x23e   :  { %1505 = vmatprep.subr.bf16.mxu0 %v1568_v3 }
 0x23f   :  { %1532 = vpow2.f32 %v969_v28 }
 0x241   :  { %v1529_v29 = vpop.eup %1528  ;;  %1507 = vmatpush3.bf16.msra.mxu0 %v1506_v11 }
 0x242   :  { %v603_v30 = vsel %vm327_vm2, %v1529_v29, 0.0 }
 0x243   :  { %v604_v31 = vrot.slane %v603_v30, 4 }
 0x245   :  { %v1531_v33 = vpop.eup %1530  ;;  %v605_v36 = vadd.f32 %v604_v31, %v603_v30 }
 0x246   :  { %v787_v37 = vsel %vm327_vm2, %v1531_v33, 0.0 }
 0x247   :  { %v606_v38 = vrot.slane %v605_v36, 2  ;;  %v788_v39 = vrot.slane %v787_v37, 4 }
 0x249   :  { %v1533_v40 = vpop.eup %1532  ;;  %v607_v41 = vadd.f32 %v606_v38, %v605_v36  ;;  %v789_v42 = vadd.f32 %v788_v39, %v787_v37  ;;  %v1179_v36 = vld [vmem:[%s1878_s8] sm:$0xff]  ;;  %v1180_v37 = vld [vmem:[%s1878_s8 + $0x8] sm:$0xff]  ;;  %v1181_v38 = vld [vmem:[%s1878_s8 + $0x10] sm:$0xff] }
 0x24a   :  { %v971_v43 = vsel %vm327_vm2, %v1533_v40, 0.0  ;;  %v1182_v39 = vld [vmem:[%s1878_s8 + $0x18] sm:$0xff] }
 0x24b   :  { %v608_v44 = vrot.slane %v607_v41, 1  ;;  %v790_v45 = vrot.slane %v789_v42, 2  ;;  %v972_v46 = vrot.slane %v971_v43, 4 }
 0x24d   :  { %v609_v47 = vadd.f32 %v608_v44, %v607_v41  ;;  %v791_v48 = vadd.f32 %v790_v45, %v789_v42  ;;  %v973_v49 = vadd.f32 %v972_v46, %v971_v43  ;;  %v1326_v45 = vld [vmem:[%s1876_s6] ss:$0 sm:$0xff] }
 0x24f   :  { %v792_v50 = vrot.slane %v791_v48, 1  ;;  %v974_v51 = vrot.slane %v973_v49, 2  ;;  %1534 = vrcp.f32 %v609_v47  ;;  %v1327_v47 = vld [vmem:[%s1877_s7] ss:$0 sm:$0xff] }
 0x251   :  { %v793_v52 = vadd.f32 %v792_v50, %v791_v48  ;;  %v975_v53 = vadd.f32 %v974_v51, %v973_v49 }
 0x253   :  { %v976_v54 = vrot.slane %v975_v53, 1  ;;  %1536 = vrcp.f32 %v793_v52 }
 0x255   :  { %v977_v55 = vadd.f32 %v976_v54, %v975_v53 }
 0x257   :  { %1538 = vrcp.f32 %v977_v55 }
 0x259   :  { %v1535_v56 = vpop.eup %1534 }
 0x25a   :  { %v611_v57 = vmul.f32 %v1535_v56, %v1529_v29 }
 0x25c   :  { %1434 = vmatpush3.msra.mxu1 %v611_v57 }
 0x25d   :  { %v1537_v58 = vpop.eup %1536  ;;  %1436 = vmatmul.mubr.msk.f32.vlgmr.msra.gmra.mrb[8].mxu1 %vm327_vm2, %v1732_v32  ;;  %1443 = vmatprep.subr.mxu1 %v1570_v8 }
 0x25e   :  { %v795_v59 = vmul.f32 %v1537_v58, %v1531_v33  ;;  %1445 = vmatprep.mubr.msk.f32.mxu1 %vm1569_vm0, %v1570_v8 }
 0x260   :  { %1444 = vmatpush3.msra.mxu1 %v795_v59 }
 0x261   :  { %v1539_v60 = vpop.eup %1538  ;;  %1446 = vmatmul.mubr.msk.f32.vlgmr.msra.gmra.mrb[10].mxu1 %vm327_vm2, %v1736_v35  ;;  %1453 = vmatprep.subr.mxu1 %v1570_v8 }
 0x262   :  { %v979_v61 = vmul.f32 %v1539_v60, %v1533_v40  ;;  %1455 = vmatprep.mubr.msk.f32.mxu1 %vm1569_vm0, %v1570_v8  ;;  %v1512_v40 = vpack.c.bf16 %v1182_v39, %v1181_v38 }
 0x264   :  { %1454 = vmatpush3.msra.mxu1 %v979_v61 }
 0x265   :  { %1456 = vmatmul.mubr.msk.f32.vlgmr.msra.gmra.mrb[12].mxu1 %vm327_vm2, %v1734_v34  ;;  %1508 = vmatprep.subr.bf16.mxu1 %v1568_v3 }
 0x266   :  { %1477 = vmatprep.mubr.msk.f32.mxu1 %vm1569_vm0, %v1570_v8 }
 0x2c1   :  { %v489_v32 = vpop.f32.mrb[6].mxu1 }
 0x2c2   :  { %496 = vrot.lane.b32.xlu1 %v489_v32, %s1574_s17  ;;  %v1427_v35 = vpop.f32.mrb[7].mxu1  ;;  %494 = vst.msk [vmem:[#allocation2] sm:$0x1] %vm493_vm3, %v489_v32 }
 0x2c3   :  { %512 = vst.msk [vmem:[#allocation2 - $0x3] sm:$0x10] %vm511_vm4, %v489_v32 }
 0x2c6   :  { %501 = vrot.lane.b32.xlu1 %v489_v32, %s1575_s18 }
 0x2ca   :  { %506 = vrot.lane.b32.xlu1 %v489_v32, %s1576_s19 }
 0x330   :  { %v681_v34 = vpop.f32.mrb[8].mxu1 }
 0x331   :  { %687 = vrot.lane.b32.xlu0 %v681_v34, %s1574_s17  ;;  %v1437_v8 = vpop.f32.mrb[9].mxu1  ;;  %685 = vst.msk [vmem:[#allocation2 + $0x2] sm:$0x1] %vm493_vm3, %v681_v34 }
 0x332   :  { %699 = vst.msk [vmem:[#allocation2 - $0x1] sm:$0x10] %vm511_vm4, %v681_v34 }
 0x334   :  { %v865_v62 = vpop.f32.mrb[10].mxu1  ;;  %v497_v63 = vpop.permute.xlu1 %496 }
 0x335   :  { %691 = vrot.lane.b32.xlu0 %v681_v34, %s1575_s18  ;;  %871 = vrot.lane.b32.xlu1 %v865_v62, %s1574_s17  ;;  %v1447_v0 = vpop.f32.mrb[11].mxu1  ;;  %500 = vst.msk [vmem:[#allocation2 - $0x1] sm:$0x2] %vm499_vm5, %v497_v63 }
 0x336   :  { %514 = vst.msk [vmem:[#allocation2 - $0x4] sm:$0x20] %vm513_vm6, %v497_v63 }
 0x337   :  { %869 = vst.msk [vmem:[#allocation2 + $0x4] sm:$0x1] %vm493_vm3, %v865_v62 }
 0x338   :  { %883 = vst.msk [vmem:[#allocation2 + $0x1] sm:$0x10] %vm511_vm4, %v865_v62  ;;  %v1049_v4 = vpop.f32.mrb[12].mxu1  ;;  %v502_v5 = vpop.permute.xlu1 %501 }
 0x339   :  { %695 = vrot.lane.b32.xlu0 %v681_v34, %s1576_s19  ;;  %875 = vrot.lane.b32.xlu1 %v865_v62, %s1575_s18  ;;  %v1457_v10 = vpop.f32.mrb[13].mxu1  ;;  %1053 = vst.msk [vmem:[#allocation2 + $0x6] sm:$0x1] %vm493_vm3, %v1049_v4  ;;  %v1330_v34 = vld [vmem:[%s1880_s10] ss:$0 sm:$0xff] }
 0x33a   :  { %1067 = vst.msk [vmem:[#allocation2 + $0x3] sm:$0x10] %vm511_vm4, %v1049_v4 }
 0x33b   :  { %505 = vst.msk [vmem:[#allocation2 - $0x2] sm:$0x4] %vm504_vm7, %v502_v5 }
 0x33c   :  { %516 = vst.msk [vmem:[#allocation2 - $0x5] sm:$0x40] %vm515_vm8, %v502_v5  ;;  %v507_v12 = vpop.permute.xlu1 %506 }
 0x33d   :  { %879 = vrot.lane.b32.xlu1 %v865_v62, %s1576_s19  ;;  %1055 = vrot.lane.b32.xlu0 %v1049_v4, %s1574_s17  ;;  %510 = vst.msk [vmem:[#allocation2 - $0x3] sm:$0x8] %vm509_vm9, %v507_v12  ;;  %v1331_v62 = vld [vmem:[%s1881_s11] ss:$0 sm:$0xff] }
 0x33e   :  { %518 = vst.msk [vmem:[#allocation2 - $0x6] sm:$0x80] %vm517_vm10, %v507_v12 }
 0x341   :  { %1059 = vrot.lane.b32.xlu0 %v1049_v4, %s1575_s18  ;;  %s1577_s18 = smov [#allocation3]  }
 0x345   :  { %1063 = vrot.lane.b32.xlu0 %v1049_v4, %s1576_s19  ;;  %s1300_s19 = sshll.u32 %s1577_s18, 4  ;;  %s1301_s19 = int_to_ptr.vmem [resolvable:$true] %s1300_s19 }
 0x346   :  { %s1544_s3 = scalar_lea.vmem %s1301_s19, 128  ;;  %p1549_p1 = scmp.lt.s32.totalorder %s1301_s19, %s1301_s19 }
 0x347   :  { %p1545_p0 = scmp.ne.s32.totalorder %s1301_s19, %s1544_s3  ;;  %p1550_p2 = scmp.lt.s32.totalorder %s1544_s3, %s1544_s3 }
 0x349   :  { %p1551_p3 = por %p1550_p2, %p1549_p1 }
 0x34b   :  { %p1552_p4 = pnand %p1551_p3, %p1545_p0 }
 0x3a3   :  { %v688_v13 = vpop.permute.xlu0 %687 }
 0x3a4   :  { %690 = vst.msk [vmem:[#allocation2 + $0x1] sm:$0x2] %vm499_vm5, %v688_v13 }
 0x3a5   :  { %700 = vst.msk [vmem:[#allocation2 - $0x2] sm:$0x20] %vm513_vm6, %v688_v13 }
 0x3a7   :  { %v692_v14 = vpop.permute.xlu0 %691  ;;  %v872_v16 = vpop.permute.xlu1 %871 }
 0x3a8   :  { %694 = vst.msk [vmem:[#allocation2] sm:$0x4] %vm504_vm7, %v692_v14 }
 0x3a9   :  { %701 = vst.msk [vmem:[#allocation2 - $0x3] sm:$0x40] %vm515_vm8, %v692_v14 }
 0x3aa   :  { %874 = vst.msk [vmem:[#allocation2 + $0x3] sm:$0x2] %vm499_vm5, %v872_v16 }
 0x3ab   :  { %884 = vst.msk [vmem:[#allocation2] sm:$0x20] %vm513_vm6, %v872_v16  ;;  %v696_v17 = vpop.permute.xlu0 %695  ;;  %v876_v18 = vpop.permute.xlu1 %875 }
 0x3ac   :  { %698 = vst.msk [vmem:[#allocation2 - $0x1] sm:$0x8] %vm509_vm9, %v696_v17 }
 0x3ad   :  { %702 = vst.msk [vmem:[#allocation2 - $0x4] sm:$0x80] %vm517_vm10, %v696_v17 }
 0x3ae   :  { %878 = vst.msk [vmem:[#allocation2 + $0x2] sm:$0x4] %vm504_vm7, %v876_v18 }
 0x3af   :  { %885 = vst.msk [vmem:[#allocation2 - $0x1] sm:$0x40] %vm515_vm8, %v876_v18  ;;  %v880_v19 = vpop.permute.xlu1 %879  ;;  %v1056_v20 = vpop.permute.xlu0 %1055 }
 0x3b0   :  { %882 = vst.msk [vmem:[#allocation2 + $0x1] sm:$0x8] %vm509_vm9, %v880_v19 }
 0x3b1   :  { %886 = vst.msk [vmem:[#allocation2 - $0x2] sm:$0x80] %vm517_vm10, %v880_v19 }
 0x3b2   :  { %1058 = vst.msk [vmem:[#allocation2 + $0x5] sm:$0x2] %vm499_vm5, %v1056_v20 }
 0x3b3   :  { %1068 = vst.msk [vmem:[#allocation2 + $0x2] sm:$0x20] %vm513_vm6, %v1056_v20  ;;  %v1060_v21 = vpop.permute.xlu0 %1059 }
 0x3b4   :  { %1062 = vst.msk [vmem:[#allocation2 + $0x4] sm:$0x4] %vm504_vm7, %v1060_v21 }
 0x3b5   :  { %1069 = vst.msk [vmem:[#allocation2 + $0x1] sm:$0x40] %vm515_vm8, %v1060_v21 }
 0x3b7   :  { %v1064_v22 = vpop.permute.xlu0 %1063 }
 0x3b8   :  { %1066 = vst.msk [vmem:[#allocation2 + $0x3] sm:$0x8] %vm509_vm9, %v1064_v22 }
 0x3b9   :  { %1070 = vst.msk [vmem:[#allocation2] sm:$0x80] %vm517_vm10, %v1064_v22 }
 0x3c0   :  { %v1071_v23 = vld [vmem:[#allocation2] sm:$0xff] }
 0x3c1   :  { %1467 = vmatmul.mubr.msk.f32.vlgmr.msra.gmra.mrb[12].mxu0 %vm51_vm1, %v1071_v23 }
 0x494   :  { %v1145_v24 = vpop.f32.mrb[12].mxu0 }
 0x495   :  { %v1146_v25 = vadd.f32 %v1145_v24, %v1678_v15  ;;  %v1468_v26 = vpop.f32.mrb[13].mxu0  ;;  %v1509_v15 = vpack.c.bf16 %v1180_v37, %v1179_v36 }
 0x497   :  { %v1149_v27 = vsel %vm51_vm1, %v1146_v25, 0.0  ;;  %1510 = vmatpush3.bf16.msra.mxu1 %v1509_v15 }
 0x498   :  { %1150 = vadd.xlane.f32.xlu1 %v1149_v27  ;;  %1511 = vmatprep.subr.bf16.mxu1 %v1568_v3  ;;  %v1328_v3 = vld [vmem:[%s1879_s9] ss:$0 sm:$0xff] }
 0x49b   :  { %1513 = vmatpush3.bf16.msra.mxu1 %v1512_v40 }
 0x525   :  { %v1151_v28 = vpop.xlane.xlu1 %1150 }
 0x526   :  { %v1153_v29 = vmul.f32 0.03125, %v1151_v28 }
 0x528   :  { %v1154_v30 = vsub.f32 %v1146_v25, %v1153_v29 }
 0x52a   :  { %v1155_v31 = vmul.f32 %v1154_v30, %v1154_v30 }
 0x52c   :  { %v1156_v33 = vsel %vm51_vm1, %v1155_v31, 0.0 }
 0x52d   :  { %1157 = vadd.xlane.f32.xlu0 %v1156_v33 }
 0x5ba   :  { %v1158_v41 = vpop.xlane.xlu0 %1157 }
 0x5bb   :  { %v1159_v42 = vmul.f32 0.03125, %v1158_v41 }
 0x5bd   :  { %v1160_v43 = vadd.f32 1e-05, %v1159_v42 }
 0x5bf   :  { %1540 = vrsqrt.f32 %v1160_v43 }
 0x5c9   :  { %v1541_v44 = vpop.eup %1540 }
 0x5ca   :  { %v1162_v46 = vmul.f32 %v1541_v44, %v1154_v30 }
 0x5cc   :  { %v1170_v48 = vmul.f32 %v1326_v45, %v1162_v46 }
 0x5ce   :  { %v1178_v49 = vadd.f32 %v1327_v47, %v1170_v48 }
 0x5d0   :  { %1478 = vmatmul.mubr.msk.f32.vlgmr.msra.gmra.mrb[14].mxu1 %vm51_vm1, %v1178_v49 }
 0x6a3   :  { %v1259_v50 = vpop.f32.mrb[14].mxu1 }
 0x6a4   :  { %v1260_v51 = vadd.f32 %v1328_v3, %v1259_v50  ;;  %v1479_v52 = vpop.f32.mrb[15].mxu1 }
 0x6a6   :  { %v1263_v53 = vadd.f32 %v1260_v51, %v1178_v49 }
 0x6a8   :  { %v1264_v54 = vsel %vm51_vm1, %v1263_v53, 0.0 }
 0x6a9   :  { %1265 = vadd.xlane.f32.xlu0 %v1264_v54 }
 0x736   :  { %v1266_v55 = vpop.xlane.xlu0 %1265 }
 0x737   :  { %v1267_v56 = vmul.f32 0.03125, %v1266_v55 }
 0x739   :  { %v1268_v57 = vsub.f32 %v1263_v53, %v1267_v56 }
 0x73b   :  { %v1269_v58 = vmul.f32 %v1268_v57, %v1268_v57 }
 0x73d   :  { %v1270_v59 = vsel %vm51_vm1, %v1269_v58, 0.0 }
 0x73e   :  { %1271 = vadd.xlane.f32.xlu1 %v1270_v59 }
 0x7cb   :  { %v1272_v60 = vpop.xlane.xlu1 %1271 }
 0x7cc   :  { %v1273_v61 = vmul.f32 0.03125, %v1272_v60 }
 0x7ce   :  { %v1274_v32 = vadd.f32 1e-05, %v1273_v61 }
 0x7d0   :  { %1542 = vrsqrt.f32 %v1274_v32 }
 0x7da   :  { %v1543_v35 = vpop.eup %1542 }
 0x7db   :  { %v1276_v8 = vmul.f32 %v1543_v35, %v1268_v57 }
 0x7dd   :  { %v1284_v63 = vmul.f32 %v1330_v34, %v1276_v8 }
 0x7df   :  { %v1292_v0 = vadd.f32 %v1331_v62, %v1284_v63 }
 0x7e1   :  { %1293 = vst.msk [vmem:[#allocation3] sm:$0xff] %vm51_vm1, %v1292_v0 }
 0x7e2   :  { %1555 = shalt.err (!%p1552_p4)
}
 0x7e3   :  { %s1556_s21 = scalar_lea.hbm %s1882_s12, 128 }
 0x7e4   :  { %p1557_p5 = scmp.ne.s32.totalorder %s1882_s12, %s1556_s21  ;;  %p1560_p6 = scmp.lt.u32.totalorder %s1556_s21, %s1882_s12 }
 0x7e6   :  { %p1562_p7 = pnand %p1560_p6, %p1557_p5 }
 0x7e8   :  { %1565 = shalt.err (!%p1562_p7)
}
 0x7e9   :  { %1303 = dma.vmem_to_hbm [thread:$0]  %s1301_s19, 128, %s1882_s12, [#allocation4]  }
 0x7ea   :  { %1566 = dma.done.wait [#allocation4], 128  }
 0x7eb   :  { %1567 = vsyncadd [#allocation4], 4294967168 }
 0x7ec   :  { %1307 = vsyncpa [#allocation4], 1 }

</bundles_post_ra>
